<compile_context>
chip_gen: v7x
topology: tpu7x:2x2x1
jax: 0.10.0
libtpu: 0.0.40
codegen_flags: <defaults>
</compile_context>

<pallas_src>
import jax
import jax.numpy as jnp
from jax.experimental import pallas as pl
from jax.experimental.pallas import tpu as pltpu


# ----------------------------------------------------------------------------
# Parameter ("buffer") construction -- plain JAX glue, matches nn.Module.__init__
# (freqs_for='lang', theta=10000, custom_freqs=None).
# ----------------------------------------------------------------------------
def build_rope_tables(dim, pt_seq_len=16, ft_seq_len=None, theta=10000.0):
    if ft_seq_len is None:
        ft_seq_len = pt_seq_len
    idx = jnp.arange(0, dim, 2)[: dim // 2].astype(jnp.float32)
    freqs = 1.0 / (theta ** (idx / dim))                              # (dim//2,)
    t = jnp.arange(ft_seq_len, dtype=jnp.float32) / ft_seq_len * pt_seq_len
    freqs = jnp.einsum("i,f->if", t, freqs)                           # (ft, dim//2)
    freqs = jnp.repeat(freqs, 2, axis=-1)                             # (ft, dim)
    f1 = jnp.broadcast_to(freqs[:, None, :], (ft_seq_len, ft_seq_len, dim))
    f2 = jnp.broadcast_to(freqs[None, :, :], (ft_seq_len, ft_seq_len, dim))
    freqs2d = jnp.concatenate([f1, f2], axis=-1)                      # (ft, ft, 2*dim)
    D = freqs2d.shape[-1]
    freqs_cos = jnp.cos(freqs2d).reshape(-1, D)                       # (ft*ft, 2*dim)
    freqs_sin = jnp.sin(freqs2d).reshape(-1, D)
    return freqs_cos, freqs_sin


def _pack_tables(freqs_cos, freqs_sin, dtype):
    """Flatten tables to (1, N*D) and fold rotate_half's sign/parity into sin.

    out[i] = x[i]*cos[i] + x[i+1]*sin_even[i] + x[i-1]*sin_odd[i]
      sin_even[i] = -sin[i] on even lanes, 0 on odd lanes
      sin_odd[i]  = +sin[i] on odd lanes,  0 on even lanes
    Built in f32, then cast once to the kernel compute dtype.
    """
    N, D = freqs_cos.shape
    C = N * D
    cos = freqs_cos.reshape(1, C).astype(jnp.float32)
    sin = freqs_sin.reshape(1, C).astype(jnp.float32)
    is_odd = ((jnp.arange(C) % 2) == 1)[None, :]
    sin_even = jnp.where(is_odd, 0.0, -sin)
    sin_odd = jnp.where(is_odd, sin, 0.0)
    return cos.astype(dtype), sin_even.astype(dtype), sin_odd.astype(dtype)


# ----------------------------------------------------------------------------
# Pallas kernel: one (rows, lanes) lane-dense slab per grid step.
# ----------------------------------------------------------------------------
def _rope_kernel(t_ref, cos_ref, sin_even_ref, sin_odd_ref, o_ref):
    x = t_ref[...]                                  # (rows, lanes), compute dtype
    W = x.shape[-1]
    # Neighbour shifts along the (flattened) lane axis.  XLU rolls, off VALU path.
    #   x_next[i] = x[(i+1) % W]  -- consumed only at even lanes (sin_even)
    #   x_prev[i] = x[(i-1) % W]  -- consumed only at odd lanes  (sin_odd)
    # Wrap lanes hit the zero entries of sin_even / sin_odd because W is an even,
    # lane-aligned width (block offsets are even too), so the result is exact.
    x_next = pltpu.roll(x, shift=W - 1, axis=1)
    x_prev = pltpu.roll(x, shift=1, axis=1)
    o_ref[...] = (x * cos_ref[...]
                  + x_next * sin_even_ref[...]
                  + x_prev * sin_odd_ref[...]).astype(o_ref.dtype)


# ----------------------------------------------------------------------------
# Block-shape / VMEM-budget selection (generation-aware, no remainder padding).
# ----------------------------------------------------------------------------
def _vmem_capacity_bytes():
    try:
        return int(pltpu.get_tpu_info().vmem_capacity_bytes)
    except Exception:
        return 128 * 1024 * 1024   # conservative fallback (v5e/v6e class)


def _choose_blocks(bh, C, itemsize, target_bytes):
    """Pick (rows, lanes) block shape.

    rows: multiple of the sublane quantum or == bh (full);
    lanes: multiple of 128 or == C (full).
    Prefers full-C slabs of ~target_bytes.  Guarantees >= 2 grid steps whenever
    the tensor is splittable (feeds both v7x TCs / keeps the pipeline busy);
    small-BH tensors split along C instead of rows.
    """
    sub = 8 if itemsize >= 4 else 16
    lane = 128
    row_bytes = C * itemsize

    rows_budget = max(1, target_bytes // row_bytes)
    if bh <= rows_budget:
        rows = bh
    elif rows_budget >= sub:
        rows = (rows_budget // sub) * sub
    else:
        rows = min(bh, sub)

    if rows * row_bytes <= target_bytes or C <= lane:
        lanes = C
    else:
        lanes = max(lane, ((target_bytes // (rows * itemsize)) // lane) * lane)

    if pl.cdiv(bh, rows) * pl.cdiv(C, lanes) < 2:
        if bh >= 2 * sub:
            rows = max(sub, ((bh // 2) // sub) * sub)
        elif lanes == C and C >= 2 * lane:
            lanes = max(lane, ((C // 2) // lane) * lane)
    return rows, lanes


# ----------------------------------------------------------------------------
# Wrapper == module.forward
# ----------------------------------------------------------------------------
def vision_rotary_embedding_fast(t, freqs_cos, freqs_sin, *, donate_input=False):
    """t: (B, H, N, D) float; freqs_cos/freqs_sin: (N, D). Returns t's shape/dtype."""
    B, H, N, D = t.shape
    assert freqs_cos.shape == (N, D) and freqs_sin.shape == (N, D)
    assert D % 2 == 0, "rotary head dim must be even"
    C = N * D
    BH = B * H

    # Compute dtype: native bf16 on bf16 inputs (v6e/v7x have bf16 VALU), else f32.
    table_dtype = jnp.bfloat16 if t.dtype == jnp.bfloat16 else jnp.float32
    table_itemsize = 2 if table_dtype == jnp.bfloat16 else 4
    cos, sin_even, sin_odd = _pack_tables(freqs_cos, freqs_sin, table_dtype)

    t_flat = t.reshape(BH, C)
    itemsize = t.dtype.itemsize

    # Generation-aware block budget: ~4 MiB on 128-MiB-VMEM parts (v5e/v6e),
    # ~2 MiB on smaller-VMEM parts (v7x's 64 MiB per TC).
    vmem_cap = _vmem_capacity_bytes()
    target_bytes = 4 * 1024 * 1024 if vmem_cap >= 96 * 1024 * 1024 else 2 * 1024 * 1024
    rows, lanes = _choose_blocks(BH, C, itemsize, target_bytes)

    # Roll-wrap masking requires even, lane-aligned C tiles (see kernel comment).
    assert C % 2 == 0
    assert lanes == C or lanes % 128 == 0

    grid = (pl.cdiv(BH, rows), pl.cdiv(C, lanes))   # ragged final blocks are masked

    # Explicit scoped-VMEM budget: 2x double-buffered in + out blocks, resident
    # tables, roll temporaries, plus headroom.  Clamped per-generation.
    promote_itemsize = max(itemsize, table_itemsize)
    blk = rows * lanes
    vmem_limit = (4 * blk * itemsize                      # 2x(in + out) buffers
                  + 6 * lanes * table_itemsize            # 2x three (1, lanes) tables
                  + 3 * blk * promote_itemsize            # x_next / x_prev / sum temps
                  + (4 << 20))
    vmem_limit = int(min(max(vmem_limit, 32 << 20), max(32 << 20, vmem_cap // 2)))

    cost = pl.CostEstimate(
        flops=5 * BH * C,
        transcendentals=0,
        bytes_accessed=2 * BH * C * itemsize + 3 * C * table_itemsize,
    )

    out_flat = pl.pallas_call(
        _rope_kernel,
        out_shape=jax.ShapeDtypeStruct((BH, C), t.dtype),
        grid_spec=pltpu.PrefetchScalarGridSpec(
            num_scalar_prefetch=0,
            grid=grid,
            in_specs=[
                pl.BlockSpec((rows, lanes), lambda i, j: (i, j)),   # streamed input
                pl.BlockSpec((1, lanes), lambda i, j: (0, j)),      # cos
                pl.BlockSpec((1, lanes), lambda i, j: (0, j)),      # -sin @ even lanes
                pl.BlockSpec((1, lanes), lambda i, j: (0, j)),      # +sin @ odd lanes
            ],
            out_specs=pl.BlockSpec((rows, lanes), lambda i, j: (i, j)),
        ),
        compiler_params=pltpu.CompilerParams(
            dimension_semantics=("parallel", "parallel"),
            vmem_limit_bytes=vmem_limit,
        ),
        cost_estimate=cost,
        input_output_aliases=({0: 0} if donate_input else {}),
    )(t_flat, cos, sin_even, sin_odd)

    return out_flat.reshape(B, H, N, D)


# ----------------------------------------------------------------------------
# Pure-JAX reference (mirrors the PyTorch forward) for a correctness check.
# ----------------------------------------------------------------------------
def _rotate_half_ref(x):
    x = x.reshape(*x.shape[:-1], x.shape[-1] // 2, 2)
    x1, x2 = x[..., 0], x[..., 1]
    x = jnp.stack((-x2, x1), axis=-1)
    return x.reshape(*x.shape[:-2], -1)


def _forward_ref(t, cos, sin):
    return t * cos + _rotate_half_ref(t) * sin


if __name__ == "__main__":
    # Small shapes consistent with the module: dim=16, ft_seq_len=4
    #   -> rope tables of shape (16, 32); input tokens N=16, head_dim D=32.
    dim = 16
    ft_seq_len = 4
    pt_seq_len = 16
    B, H = 2, 2
    N = ft_seq_len * ft_seq_len
    D = 2 * dim

    freqs_cos, freqs_sin = build_rope_tables(dim, pt_seq_len=pt_seq_len,
                                             ft_seq_len=ft_seq_len)

    key = jax.random.PRNGKey(0)
    t = jax.random.normal(key, (B, H, N, D), dtype=jnp.float32)

    out = vision_rotary_embedding_fast(t, freqs_cos, freqs_sin)
    out = jax.block_until_ready(out)

    ref = _forward_ref(t, freqs_cos, freqs_sin)
    assert out.shape == t.shape and out.dtype == t.dtype
    assert jnp.allclose(out, ref, atol=1e-5, rtol=1e-5), "mismatch vs reference"

    print("KERNEL_OK")
</pallas_src>

<mosaic_0001>
module attributes {stable_mosaic.version = 11 : i64} {
  func.func @_rope_kernel(%arg0: i32, %arg1: i32, %arg2: memref<4x256xf32, #tpu.memory_space<vmem>>, %arg3: memref<1x256xf32, #tpu.memory_space<vmem>>, %arg4: memref<1x256xf32, #tpu.memory_space<vmem>>, %arg5: memref<1x256xf32, #tpu.memory_space<vmem>>, %arg6: memref<4x256xf32, #tpu.memory_space<vmem>>) attributes {dimension_semantics = [#tpu.dimension_semantics<parallel>, #tpu.dimension_semantics<parallel>], iteration_bounds = array<i64: 1, 2>, scalar_prefetch = 0 : i64, scratch_operands = 0 : i64, tpu.core_type = #tpu.core_type<tc>, window_params = [{transform_indices = @transform_0, window_bounds = array<i64: 4, 256>}, {transform_indices = @transform_1, window_bounds = array<i64: 1, 256>}, {transform_indices = @transform_2, window_bounds = array<i64: 1, 256>}, {transform_indices = @transform_3, window_bounds = array<i64: 1, 256>}, {transform_indices = @transform_4, window_bounds = array<i64: 4, 256>}]} {
    %c0 = arith.constant 0 : index
    %c0_0 = arith.constant 0 : index
    %0 = vector.load %arg2[%c0, %c0_0] : memref<4x256xf32, #tpu.memory_space<vmem>>, vector<4x256xf32>
    %c255_i32 = arith.constant 255 : i32
    %1 = tpu.dynamic_rotate %0 by %c255_i32 dim 1 : vector<4x256xf32>, i32 -> vector<4x256xf32>
    %c1_i32 = arith.constant 1 : i32
    %2 = tpu.dynamic_rotate %0 by %c1_i32 dim 1 : vector<4x256xf32>, i32 -> vector<4x256xf32>
    %c0_1 = arith.constant 0 : index
    %c0_2 = arith.constant 0 : index
    %3 = vector.load %arg3[%c0_1, %c0_2] : memref<1x256xf32, #tpu.memory_space<vmem>>, vector<1x256xf32>
    %4 = vector.broadcast %3 : vector<1x256xf32> to vector<4x256xf32>
    %5 = arith.mulf %0, %4 : vector<4x256xf32>
    %c0_3 = arith.constant 0 : index
    %c0_4 = arith.constant 0 : index
    %6 = vector.load %arg4[%c0_3, %c0_4] : memref<1x256xf32, #tpu.memory_space<vmem>>, vector<1x256xf32>
    %7 = vector.broadcast %6 : vector<1x256xf32> to vector<4x256xf32>
    %8 = arith.mulf %1, %7 : vector<4x256xf32>
    %9 = arith.addf %5, %8 : vector<4x256xf32>
    %c0_5 = arith.constant 0 : index
    %c0_6 = arith.constant 0 : index
    %10 = vector.load %arg5[%c0_5, %c0_6] : memref<1x256xf32, #tpu.memory_space<vmem>>, vector<1x256xf32>
    %11 = vector.broadcast %10 : vector<1x256xf32> to vector<4x256xf32>
    %12 = arith.mulf %2, %11 : vector<4x256xf32>
    %13 = arith.addf %9, %12 : vector<4x256xf32>
    %c0_7 = arith.constant 0 : index
    %c0_8 = arith.constant 0 : index
    %14 = vector.load %arg6[%c0_7, %c0_8] : memref<4x256xf32, #tpu.memory_space<vmem>>, vector<4x256xf32>
    tpu.vector_store %arg6[%c0_7, %c0_8], %13 {strides = array<i32>} : memref<4x256xf32, #tpu.memory_space<vmem>>, vector<4x256xf32>,
    return
  }
  func.func @transform_0(%arg0: i32, %arg1: i32) -> (i32, i32) {
    %c0_i32 = arith.constant 0 : i32
    return %arg0, %arg1 : i32, i32
  }
  func.func @transform_1(%arg0: i32, %arg1: i32) -> (i32, i32) {
    %c0_i32 = arith.constant 0 : i32
    %c0_i32_0 = arith.constant 0 : i32
    return %c0_i32, %arg1 : i32, i32
  }
  func.func @transform_2(%arg0: i32, %arg1: i32) -> (i32, i32) {
    %c0_i32 = arith.constant 0 : i32
    %c0_i32_0 = arith.constant 0 : i32
    return %c0_i32, %arg1 : i32, i32
  }
  func.func @transform_3(%arg0: i32, %arg1: i32) -> (i32, i32) {
    %c0_i32 = arith.constant 0 : i32
    %c0_i32_0 = arith.constant 0 : i32
    return %c0_i32, %arg1 : i32, i32
  }
  func.func @transform_4(%arg0: i32, %arg1: i32) -> (i32, i32) {
    %c0_i32 = arith.constant 0 : i32
    return %arg0, %arg1 : i32, i32
  }
}

</mosaic_0001>

<bundles_post_ra>
// kernel: tpu_custom_call.1
= control target key start
LH: loop header
LB: loop body
LE: loop exit
PB: predicated region body
PF: predicated region fallthrough
CT: control target
= control target key end

     0   :  { %9 = vsyncpa [#allocation3], 0  ;;  %s1023_s0 = inlined_call_operand.hbm [shape: f32[4,512], index: 0, kind: input, shape index: {}]   ;;  %s1024_s1 = inlined_call_operand.hbm [shape: f32[1,512], index: 1, kind: input, shape index: {}]   ;;  %s1025_s2 = inlined_call_operand.vmem [shape: f32[1,512], index: 2, kind: input, shape index: {}]   ;;  %s1026_s3 = inlined_call_operand.vmem [shape: f32[1,512], index: 3, kind: input, shape index: {}]   ;;  %s1027_s4 = inlined_call_operand.hbm [shape: f32[4,512], index: 4, kind: output, shape index: {}]  }
   0x1   :  { %11 = vsyncpa [#allocation3 + $0x1], 0 }
   0x2   :  { %12 = vsyncpa [#allocation6], 0 }
   0x3   :  { %14 = vsyncpa [#allocation6 + $0x1], 0 }
   0x4   :  { %15 = vsyncpa [#allocation4], 0 }
   0x5   :  { %17 = vsyncpa [#allocation4 + $0x1], 0  ;;  %s797_s15 = smov 0   ;;  %s799_s16 = smov 0  }
   0x6   :  { %s801_s17 = smov 0   ;;  %s803_s18 = smov 0  }
   0x7   :  { %s805_s19 = smov 0   ;;  %s807_s20 = smov 0  }
   0x8 LB: > { %s525_s21 = sadd.s32 4294967295, %s765_s20   ;;  %s526_s22 = sadd.s32 4294967294, %s765_s20   ;;  %s765_s20 = sphi %s807_s20, %s23_s20   ;;  %s761_s19 = sphi %s805_s19, %s1047_s19   ;;  %s757_s18 = sphi %s803_s18, %s1046_s18   ;;  %s753_s17 = sphi %s801_s17, %s1045_s17   ;;  %s749_s16 = sphi %s799_s16, %s1044_s16   ;;  %s745_s15 = sphi %s797_s15, %s1043_s15  }
   0x9   : > { %s32_s23 = sadd.s32 1, %s761_s19  ;;  %s44_s24 = sadd.s32 1, %s753_s17 }
   0xa   : > { %p33_p0 = scmp.ge.s32.totalorder %s32_s23, 2  ;;  %p51_p1 = scmp.ne.s32.totalorder %s753_s17, %s749_s16 }
   0xb   : > { %p52_p2 = scmp.eq.s32.totalorder %s765_s20, 0  ;;  %p57_p3 = scmp.ne.s32.totalorder %s749_s16, %s745_s15 }
   0xc   : > { %s1049_s23 = smov (%p33_p0, %s32_s23), 0  ;;  %p58_p5 = scmp.eq.s32.totalorder %s525_s21, 0 }
   0xd   : > { %p838_p4 = por %p52_p2, %p51_p1  ;;  %s40_s26 = ssub.s32 %s761_s19, %s1049_s23 }
   0xe   : > { %p161_p6 = scmp.eq.s32.totalorder %s525_s21, 1  ;;  %p42_p7 = scmp.eq.s32.totalorder %s40_s26, 0 }
   0xf   : > { %p844_p8 = por %p58_p5, %p57_p3  ;;  %p167_p10 = scmp.eq.s32.totalorder %s526_s22, 1 }
  0x10   : > { %p848_p9 = por %p161_p6, %p51_p1  ;;  %p566_p13 = scmp.lt.s32.totalorder %s765_s20, 2 }
  0x11   : > { %s1031_s27 = scalar_select %p844_p8, 1, 0 }
  0x12   : > { %s1032_s28 = scalar_select %p848_p9, 1, 0 }
  0x13   : > { %s853_s29 = scalar_select %p42_p7, %s753_s17, %s44_s24  }
  0x14   : > { %p855_p11 = por %p167_p10, %p57_p3  ;;  %s862_s5 = sand.u32 1, %s753_s17  }
  0x15   : > { %s529_s6 = sshll.u32 %s862_s5, 3  ;;  %s546_s7 = sshll.u32 %s761_s19, 7 }
  0x16   : > { %s1033_s30 = scalar_select %p855_p11, 1, 0 }
  0x17   : > { %s869_s10 = scalar_lea.hbm %s1023_s0, %s546_s7  ;;  %s191_s11 = scalar_lea.vmem [#allocation2], %s529_s6 }
  0x18   : > { %s201_s12 = sshll.u32 %s191_s11, 4  ;;  %p875_p0 = pnand %p566_p13, %p838_p4  ;;  %s871_s12 = int_to_ptr.vmem [resolvable:$true] %s201_s12 }
  0x19   : > { %s188_s14 = scalar_lea.sflag [#allocation3], %s862_s5  ;;  %s619_s21 = scalar_lea.hbm %s869_s10, 128 }
  0x1a   : > { %p620_p3 = scmp.ne.s32.totalorder %s869_s10, %s619_s21  ;;  %p621_p5 = pneg %p875_p0 }
  0x1b   : > { %s624_s25 = scalar_lea.hbm %s1023_s0, 256  ;;  %p625_p4 = scmp.lt.u32.totalorder %s869_s10, %s1023_s0 }
  0x1c   : > { %p622_p6 = pnand %p621_p5, %p620_p3  ;;  %p626_p10 = scmp.lt.u32.totalorder %s624_s25, %s619_s21 }
  0x1d   : > { %p628_p12 = scmp.lt.u32.totalorder %s619_s21, %s869_s10 }
  0x1e   : > { %p623_p7 = pneg %p622_p6  ;;  %p627_p13 = por %p626_p10, %p625_p4 }
  0x20   : > { %p629_p1 = por %p628_p12, %p627_p13 }
  0x22   : > { %p630_p2 = pnand %p629_p1, %p623_p7 }
  0x24   : > { %633 = shalt.err (!%p630_p2)
}
  0x25   : > { %s634_s7 = scalar_lea.vmem %s871_s12, 128  ;;  %s767_s8 = smov [#allocation2]  }
  0x26   : > { %p635_p3 = scmp.ne.s32.totalorder %s871_s12, %s634_s7  ;;  %s639_s9 = sshll.u32 %s767_s8, 4  ;;  %s640_s9 = int_to_ptr.vmem [resolvable:$false] %s639_s9 }
  0x27   : > { %s641_s11 = scalar_lea.vmem %s640_s9, 256  ;;  %p642_p9 = scmp.lt.s32.totalorder %s871_s12, %s640_s9 }
  0x28   : > { %p637_p6 = pnand %p635_p3, %p621_p5  ;;  %p643_p4 = scmp.lt.s32.totalorder %s641_s11, %s634_s7 }
  0x2a   : > { %p638_p11 = pneg %p637_p6  ;;  %p644_p10 = por %p643_p4, %p642_p9 }
  0x2c   : > { %p645_p12 = pnand %p644_p10, %p638_p11 }
  0x2e   : > { %648 = shalt.err (!%p645_p12)
}
  0x2f   : > { %558 = dma.hbm_to_vmem [thread:$0]  (!%p875_p0), %s869_s10, 128, %s871_s12, %s188_s14  }
  0x30   : > { %p1035_p1 = scmp.lt.s32.totalorder %s765_s20, 3  ;;  %p1036_p2 = scmp.ge.s32.totalorder %s765_s20, 1 }
  0x31   : > { %s532_s22 = sshll.u32 %s862_s5, 1  ;;  %s547_s24 = sshll.u32 %s761_s19, 5 }
  0x32   : > { %p911_p7 = pnand %p1036_p2, %p1035_p1  ;;  %s920_s6 = scalar_lea.hbm %s1024_s1, %s547_s24 }
  0x33   : > { %s212_s7 = scalar_lea.vmem [#allocation5], %s532_s22  ;;  %s209_s10 = scalar_lea.sflag [#allocation6], %s862_s5 }
  0x34   : > { %s1037_s21 = scalar_select %p911_p7, 1, 0 }
  0x35   : > { %s220_s8 = sshll.u32 %s212_s7, 4  ;;  %s649_s12 = scalar_lea.hbm %s920_s6, 32  ;;  %s221_s8 = int_to_ptr.vmem [resolvable:$true] %s220_s8 }
  0x36   : > { %p650_p9 = scmp.ne.s32.totalorder %s920_s6, %s649_s12  ;;  %s654_s11 = scalar_lea.hbm %s1024_s1, 64 }
  0x37   : > { %p655_p3 = scmp.lt.u32.totalorder %s920_s6, %s1024_s1  ;;  %p656_p6 = scmp.lt.u32.totalorder %s654_s11, %s649_s12 }
  0x38   : > { %p652_p11 = pnand %p650_p9, %p621_p5  ;;  %p658_p10 = scmp.lt.u32.totalorder %s649_s12, %s920_s6 }
  0x39   : > { %p657_p4 = por %p656_p6, %p655_p3 }
  0x3a   : > { %p653_p13 = pneg %p652_p11 }
  0x3b   : > { %p659_p12 = por %p658_p10, %p657_p4 }
  0x3d   : > { %p660_p1 = pnand %p659_p12, %p653_p13 }
  0x3f   : > { %663 = shalt.err (!%p660_p1)
}
  0x40   : > { %s664_s5 = scalar_lea.vmem %s221_s8, 32  ;;  %s768_s22 = smov [#allocation5]  }
  0x41   : > { %p665_p2 = scmp.ne.s32.totalorder %s221_s8, %s664_s5  ;;  %s669_s26 = sshll.u32 %s768_s22, 4  ;;  %s670_s26 = int_to_ptr.vmem [resolvable:$false] %s669_s26 }
  0x42   : > { %s671_s7 = scalar_lea.vmem %s670_s26, 64  ;;  %p672_p8 = scmp.lt.s32.totalorder %s221_s8, %s670_s26 }
  0x43   : > { %p667_p9 = pnand %p665_p2, %p621_p5  ;;  %p673_p7 = scmp.lt.s32.totalorder %s671_s7, %s664_s5 }
  0x45   : > { %p668_p11 = pneg %p667_p9  ;;  %p674_p3 = por %p673_p7, %p672_p8 }
  0x47   : > { %p675_p6 = pnand %p674_p3, %p668_p11 }
  0x49   : > { %678 = shalt.err (!%p675_p6)
}
  0x4a   : > { %561 = dma.hbm_to_vmem [thread:$0]  (!%p875_p0), %s920_s6, 32, %s221_s8, %s209_s10  }
  0x4b   : > { %p1038_p13 = scmp.ne.s32.totalorder %s1037_s21, 0 }
  0x4c   : > { %s945_s12 = sand.u32 (!%p1038_p13), 1, %s749_s16   ;;  %p1039_p8 = scmp.ne.s32.totalorder (!%p1038_p13), %s1031_s27, 0 }
  0x4d   : > { %245 = sbr.rel (%p1038_p13) target bundleno = 231 (0xe7), region = 36  ;;  %s536_s14 = sshll.u32 (!%p1038_p13), %s945_s12, 3 }
  0x4e   : > { %s248_s9 = scalar_lea.sflag (!%p1038_p13), [#allocation3], %s945_s12  ;;  %s251_s11 = scalar_lea.vmem (!%p1038_p13), [#allocation2], %s536_s14 }
  0x54   : > { %732 = dma.done.wait (%p1039_p8), %s248_s9, 128  }
  0x55   : > { %734 = vsyncadd (%p1039_p8), %s248_s9, 4294967168  ;;  %s537_s13 = sshll.u32 %s945_s12, 1  ;;  %s257_s21 = scalar_lea.sflag [#allocation6], %s945_s12 }
  0x56   : > { %s260_s6 = scalar_lea.vmem [#allocation5], %s537_s13 }
  0x57   : > { %736 = dma.done.wait (%p1039_p8), %s257_s21, 32  }
  0x58   : > { %738 = vsyncadd (%p1039_p8), %s257_s21, 4294967264  ;;  %v311_v0 = vld [vmem:[%s251_s11] sm:$0xff]  ;;  %s769_s8 = smov 1   ;;  %s770_s10 = smov 127   ;;  %v319_v2 = vlaneseq  ;;  %v331_v6 = vld [vmem:[%s260_s6] sm:$0x3] }
  0x59   : > { %324 = vrot.lane.b32.xlu1 %v311_v0, %s769_s8  ;;  %315 = vrot.lane.b32.xlu0 %v311_v0, %s770_s10  ;;  %v313_v1 = vcombine.high %v311_v0, %v311_v0  ;;  %s539_s24 = sshll.u32 %s757_s18, 1  ;;  %s548_s9 = sshll.u32 %s757_s18, 7 }
  0x5a   : > { %v334_v3 = vshrl.u32 %v319_v2, 7  ;;  %p301_p0 = scmp.lt.s32.totalorder %s539_s24, 3  ;;  %v320_v9 = vand.u32 127, %v319_v2  ;;  %s297_s11 = scalar_lea.vmem [#allocation7], %s536_s14 }
  0x5b   : > { %s400_s13 = sshll.u32 %s297_s11, 4  ;;  %p1040_p7 = scmp.ne.s32.totalorder %s1032_s28, 0  ;;  %s976_s13 = int_to_ptr.vmem [resolvable:$true] %s400_s13 }
  0x5c   : > { %v335_v4 = vsub.s32 0, %v334_v3  ;;  %v339_v5 = vsub.s32 1, %v334_v3  ;;  %s1051_s24 = smov (!%p301_p0, %s539_s24), 3  ;;  %vm328_vm0 = vcmp.lt.s32.totalorder %v320_v9, 1  ;;  %vm321_vm1 = vcmp.lt.s32.totalorder %v320_v9, 127  ;;  %s771_s18 = smov [#allocation7]  }
  0x5d   : > { %326 = vrot.lane.b32.xlu1 %v313_v1, %s769_s8  ;;  %317 = vrot.lane.b32.xlu0 %v313_v1, %s770_s10  ;;  %s308_s5 = scalar_lea.vmem %s1026_s3, %s1051_s24  ;;  %s303_s7 = scalar_lea.vmem %s1025_s2, %s1051_s24 }
  0x5e   : > { %v336_v7 = vrot.slane %v331_v6, %v335_v4  ;;  %v340_v8 = vrot.slane %v331_v6, %v339_v5  ;;  %v363_v10 = vld [vmem:[%s308_s5] sm:$0x3]  ;;  %s974_s8 = scalar_lea.hbm %s1027_s4, %s548_s9  ;;  %s384_s10 = scalar_lea.sflag [#allocation4], %s945_s12 }
  0x5f   : > { %v344_v11 = vld [vmem:[%s303_s7] sm:$0x3]  ;;  %v368_v15 = vrot.slane %v363_v10, %v335_v4  ;;  %v372_v16 = vrot.slane %v363_v10, %v339_v5  ;;  %s679_s24 = scalar_lea.vmem %s976_s13, 128  ;;  %s683_s14 = sshll.u32 %s771_s18, 4  ;;  %s684_s14 = int_to_ptr.vmem [resolvable:$false] %s683_s14 }
  0x60   : > { %v341_v12 = vcombine.low %v336_v7, %v340_v8  ;;  %v349_v17 = vrot.slane %v344_v11, %v335_v4  ;;  %v353_v18 = vrot.slane %v344_v11, %v339_v5  ;;  %p680_p5 = scmp.ne.s32.totalorder %s976_s13, %s679_s24  ;;  %s685_s27 = scalar_lea.vmem %s684_s14, 256 }
  0x61   : > { %p686_p12 = scmp.lt.s32.totalorder %s976_s13, %s684_s14  ;;  %p687_p1 = scmp.lt.s32.totalorder %s685_s27, %s679_s24 }
  0x62   : > { %v343_v19 = vmul.f32 %v341_v12, %v311_v0  ;;  %p681_p4 = pnand %p680_p5, %p1040_p7 }
  0x63   : > { %p688_p2 = por %p687_p1, %p686_p12 }
  0x64   : > { %p682_p10 = pneg %p681_p4 }
  0x66   : > { %p689_p9 = pnand %p688_p2, %p682_p10 }
  0xcb   : > { %v325_v13 = vpop.permute.xlu1 %324  ;;  %v316_v14 = vpop.permute.xlu0 %315 }
  0xcf   : > { %v327_v20 = vpop.permute.xlu1 %326  ;;  %v318_v21 = vpop.permute.xlu0 %317 }
  0xd0   : > { %v329_v22 = vsel %vm328_vm0, %v325_v13, %v327_v20  ;;  %v330_v23 = vsel %vm328_vm0, %v327_v20, %v325_v13  ;;  %v322_v24 = vsel %vm321_vm1, %v316_v14, %v318_v21  ;;  %v323_v25 = vsel %vm321_vm1, %v318_v21, %v316_v14 }
  0xd1   : > { %v375_v26 = vmul.f32 %v368_v15, %v330_v23  ;;  %v376_v27 = vmul.f32 %v372_v16, %v329_v22  ;;  %v356_v28 = vmul.f32 %v349_v17, %v322_v24  ;;  %v357_v29 = vmul.f32 %v353_v18, %v323_v25 }
  0xd3   : > { %v360_v30 = vcombine.low %v356_v28, %v357_v29  ;;  %v379_v31 = vcombine.low %v375_v26, %v376_v27 }
  0xd5   : > { %v362_v32 = vadd.f32 %v360_v30, %v343_v19 }
  0xd7   : > { %v381_v33 = vadd.f32 %v379_v31, %v362_v32 }
  0xd9   : > { %382 = vst [vmem:[%s297_s11] sm:$0xff] %v381_v33 }
  0xda   : > { %692 = shalt.err (!%p689_p9)
}
  0xdb   : > { %s693_s12 = scalar_lea.hbm %s974_s8, 128  ;;  %s697_s22 = scalar_lea.hbm %s1027_s4, 256 }
  0xdc   : > { %p694_p11 = scmp.ne.s32.totalorder %s974_s8, %s693_s12  ;;  %p698_p13 = scmp.lt.u32.totalorder %s974_s8, %s1027_s4 }
  0xdd   : > { %p699_p8 = scmp.lt.u32.totalorder %s697_s22, %s693_s12  ;;  %p701_p5 = scmp.lt.u32.totalorder %s693_s12, %s974_s8 }
  0xde   : > { %p695_p3 = pnand %p694_p11, %p1040_p7 }
  0xdf   : > { %p700_p0 = por %p699_p8, %p698_p13 }
  0xe0   : > { %p696_p6 = pneg %p695_p3 }
  0xe1   : > { %p702_p4 = por %p701_p5, %p700_p0 }
  0xe3   : > { %p703_p10 = pnand %p702_p4, %p696_p6 }
  0xe5   : > { %706 = shalt.err (!%p703_p10)
}
  0xe6   : > { %553 = dma.vmem_to_hbm [thread:$0]  (%p1040_p7), %s976_s13, 128, %s974_s8, %s384_s10  }
  0xe7 PF: > { %s412_s9 = sand.u32 1, %s745_s15   ;;  %p1041_p12 = scmp.ne.s32.totalorder %s1033_s30, 0 }
  0xe8   : > { %p1042_p1 = scmp.ge.s32.totalorder %s765_s20, 2  ;;  %s413_s11 = scalar_lea.sflag [#allocation4], %s412_s9 }
  0xea   : > { %p563_p2 = pnand %p1042_p1, %p1041_p12 }
  0xec   : > { %740 = dma.done.wait (!%p563_p2), %s413_s11, 128  }
  0xed   : > { %742 = vsyncadd (!%p563_p2), %s413_s11, 4294967168  ;;  %s23_s20 = sadd.s32 1, %s765_s20   ;;  %s1043_s15 = smov %s749_s16 }
  0xee   : > { %p20_p9 = scmp.ge.s32.totalorder %s23_s20, 4   ;;  %s1044_s16 = smov %s753_s17 }
  0xef   : > { %s1045_s17 = smov %s853_s29  ;;  %s1046_s18 = smov %s761_s19 }
  0xf0   : > { %s1047_s19 = smov %s1049_s23  ;;  %22 = sbr.rel (!%p20_p9) target bundleno = 8 (0x8), region = 100 }
  0xf7   :  { %418 = vsyncpa [#allocation3], 1 }
  0xf8   :  { %420 = vsyncpa [#allocation3 + $0x1], 1 }
  0xf9   :  { %421 = vsyncpa [#allocation6], 1 }
  0xfa   :  { %423 = vsyncpa [#allocation6 + $0x1], 1 }
  0xfb   :  { %424 = vsyncpa [#allocation4], 1 }
  0xfc   :  { %426 = vsyncpa [#allocation4 + $0x1], 1 }

</bundles_post_ra>
